<compile_context>
chip_gen: v7x
topology: tpu7x:2x2x1
jax: 0.10.0
libtpu: 0.0.40
codegen_flags: <defaults>
</compile_context>

<pallas_src>
import functools

import jax
import jax.numpy as jnp
from jax.experimental import pallas as pl
from jax.experimental.pallas import tpu as pltpu


def _fused_kernel(x_ref, pcol_ref, prow_ref, ps_ref, tcol_ref, trow_ref,
                  loss_ref, prec_ref, acc_ref, *, margin, inv_n):
    """Accumulate pscore-weighted per-part distances; mine + reduce on the last step."""
    p = pl.program_id(0)
    n_parts = pl.num_programs(0)

    @pl.when(p == 0)
    def _():
        acc_ref[...] = jnp.zeros_like(acc_ref)

    x = x_ref[...]                                                   # (n, d) f32
    # bf16 gram matmul with f32 accumulation (transpose done in f32, then cast).
    xb = x.astype(jnp.bfloat16)
    xbt = x.T.astype(jnp.bfloat16)
    g = jnp.dot(xb, xbt, preferred_element_type=jnp.float32)         # (n, n)
    sq = jnp.sum(x * x, axis=1, keepdims=True)                       # (n, 1) f32
    d2 = sq + sq.T - 2.0 * g
    # torch: clamp(min=1e-15); clamp(min=1e-12).sqrt()  ->  sqrt(max(d2, 1e-12))
    dist = jnp.sqrt(jnp.maximum(d2, 1e-12))

    # Numerator of the per-part weight: pscore[i, p] * pscore[j, p]  (columns arrive via DMA).
    w_num = pcol_ref[...] * prow_ref[...]                            # (n,1)*(1,n) -> (n, n)
    acc_ref[...] += dist * w_num

    @pl.when(p == n_parts - 1)
    def _():
        ps = ps_ref[...]                                             # (n, P)
        denom = jnp.dot(ps, ps.T, preferred_element_type=jnp.float32)  # sum_q ps[i,q]*ps[j,q]
        dmat = acc_ref[...] / denom                                  # single divide, once per call

        mask = tcol_ref[...] == trow_ref[...]                        # (n, n) same-id mask
        pos = jnp.where(mask, dmat, -jnp.inf)
        neg = jnp.where(mask, jnp.inf, dmat)
        dist_ap = jnp.max(pos, axis=1, keepdims=True)                # (n, 1)
        dist_an = jnp.min(neg, axis=1, keepdims=True)                # (n, 1)
        # MarginRankingLoss(margin)(dist_an, dist_ap, y=1) = mean(relu(dist_ap - dist_an + margin))
        losses = jnp.maximum(dist_ap - dist_an + margin, 0.0)
        loss_ref[...] = jnp.sum(losses, keepdims=True) * inv_n       # (1, 1)
        prec_ref[...] = jnp.sum((dist_an > dist_ap).astype(jnp.float32),
                                keepdims=True) * inv_n               # (1, 1)


def partial_triplet_loss(inputs, targets, part_labels, pscore, margin=0.0):
    """inputs: (n, d, P) float; targets: (n,) int; part_labels: unused (dead code); pscore: (n, P)."""
    del part_labels  # dead code in the reference forward (join_flag/num never used in the loss)
    n, d, P = inputs.shape

    x = jnp.transpose(inputs.astype(jnp.float32), (2, 0, 1))         # (P, n, d)
    ps = pscore.astype(jnp.float32)                                  # (n, P)
    ps_t = jnp.transpose(ps, (1, 0))                                 # (P, n)
    ps_col = ps_t[:, :, None]                                        # (P, n, 1) -> per-part column
    ps_row = ps_t[:, None, :]                                        # (P, 1, n) -> per-part row
    t = targets.astype(jnp.int32)
    t_col = t[:, None]                                               # (n, 1)
    t_row = t[None, :]                                               # (1, n)

    grid_spec = pltpu.PrefetchScalarGridSpec(
        num_scalar_prefetch=0,
        grid=(P,),
        in_specs=[
            pl.BlockSpec((pl.Squeezed(), n, d), lambda p: (p, 0, 0)),   # X_p       (n, d)
            pl.BlockSpec((pl.Squeezed(), n, 1), lambda p: (p, 0, 0)),   # ps[:, p]  (n, 1)
            pl.BlockSpec((pl.Squeezed(), 1, n), lambda p: (p, 0, 0)),   # ps[:, p]  (1, n)
            pl.BlockSpec((n, P), lambda p: (0, 0)),                     # full pscore (denominator)
            pl.BlockSpec((n, 1), lambda p: (0, 0)),                     # targets col
            pl.BlockSpec((1, n), lambda p: (0, 0)),                     # targets row
        ],
        out_specs=[
            pl.BlockSpec((1, 1), lambda p: (0, 0)),                     # loss
            pl.BlockSpec((1, 1), lambda p: (0, 0)),                     # prec
        ],
        scratch_shapes=[pltpu.VMEM((n, n), jnp.float32)],               # resident distance acc
    )

    loss, prec = pl.pallas_call(
        functools.partial(_fused_kernel, margin=float(margin), inv_n=1.0 / float(n)),
        out_shape=(
            jax.ShapeDtypeStruct((1, 1), jnp.float32),
            jax.ShapeDtypeStruct((1, 1), jnp.float32),
        ),
        grid_spec=grid_spec,
        compiler_params=pltpu.CompilerParams(dimension_semantics=("arbitrary",)),
    )(x, ps_col, ps_row, ps, t_col, t_row)
    return loss[0, 0], prec[0, 0]


def _reference(inputs, targets, pscore, margin=0.0, bf16_gram=True):
    """Pure-JAX reference of the PyTorch forward.

    With bf16_gram=True the gram matmul mirrors the kernel's bf16-input / f32-accumulation
    precision (everything else f32); with bf16_gram=False it is the full-f32 PyTorch semantics.
    """
    x = inputs.astype(jnp.float32)
    sq = jnp.sum(x * x, axis=1)                                      # (n, P)
    xg = x.astype(jnp.bfloat16) if bf16_gram else x
    g = jnp.einsum("idp,jdp->ijp", xg, xg, preferred_element_type=jnp.float32)
    d2 = sq[:, None, :] + sq[None, :, :] - 2.0 * g
    pd = jnp.sqrt(jnp.maximum(d2, 1e-12))
    wj = pscore[:, None, :] * pscore[None, :, :]
    wj = wj / jnp.sum(wj, axis=2, keepdims=True)
    dist = jnp.sum(pd * wj, axis=2)
    mask = targets[:, None] == targets[None, :]
    dist_ap = jnp.max(jnp.where(mask, dist, -jnp.inf), axis=1)
    dist_an = jnp.min(jnp.where(mask, jnp.inf, dist), axis=1)
    loss = jnp.mean(jnp.maximum(dist_ap - dist_an + margin, 0.0))
    prec = jnp.mean((dist_an > dist_ap).astype(jnp.float32))
    return loss, prec


if __name__ == "__main__":
    key = jax.random.PRNGKey(0)
    n, d, P = 8, 32, 6
    k1, k2 = jax.random.split(key)

    inputs = jax.random.normal(k1, (n, d, P), jnp.float32)           # (batch, feat_dim, parts)
    targets = jnp.array([0, 0, 1, 1, 2, 2, 3, 3], jnp.int32)         # >=2 ids -> negatives exist
    pscore = jax.random.uniform(k2, (n, P), jnp.float32, minval=0.1, maxval=1.0)
    # part_labels columns 2 / -3 are the visible-part start / end (dead code in the loss)
    part_labels = jnp.zeros((n, 6), jnp.int32).at[:, 3].set(P - 1)

    loss, prec = partial_triplet_loss(inputs, targets, part_labels, pscore, margin=0.0)
    jax.block_until_ready((loss, prec))

    # Tight check against a reference that mirrors the kernel's bf16-gram / f32-everything-else
    # precision (the bf16 gram is the only intentional precision deviation from PyTorch f32).
    ref_loss, ref_prec = _reference(inputs, targets, pscore, margin=0.0, bf16_gram=True)
    assert jnp.allclose(loss, ref_loss, rtol=1e-4, atol=1e-5), (loss, ref_loss)
    assert jnp.allclose(prec, ref_prec, rtol=1e-6, atol=1e-6), (prec, ref_prec)

    # Loose sanity check against the full-f32 PyTorch semantics (bf16 gram rounding only).
    f32_loss, _ = _reference(inputs, targets, pscore, margin=0.0, bf16_gram=False)
    assert jnp.allclose(loss, f32_loss, rtol=5e-2, atol=1e-1), (loss, f32_loss)

    print("KERNEL_OK")
</pallas_src>

<mosaic_0001>
module attributes {stable_mosaic.version = 11 : i64} {
  func.func @_fused_kernel(%arg0: i32, %arg1: memref<1x8x32xf32, #tpu.memory_space<vmem>>, %arg2: memref<1x8x1xf32, #tpu.memory_space<vmem>>, %arg3: memref<1x1x8xf32, #tpu.memory_space<vmem>>, %arg4: memref<8x6xf32, #tpu.memory_space<vmem>>, %arg5: memref<8x1xi32, #tpu.memory_space<vmem>>, %arg6: memref<1x8xi32, #tpu.memory_space<vmem>>, %arg7: memref<1x1xf32, #tpu.memory_space<vmem>>, %arg8: memref<1x1xf32, #tpu.memory_space<vmem>>, %arg9: memref<8x8xf32, #tpu.memory_space<vmem>>) attributes {dimension_semantics = [#tpu.dimension_semantics<arbitrary>], iteration_bounds = array<i64: 6>, scalar_prefetch = 0 : i64, scratch_operands = 1 : i64, tpu.core_type = #tpu.core_type<tc>, window_params = [{transform_indices = @transform_0, window_bounds = array<i64: 1, 8, 32>}, {transform_indices = @transform_1, window_bounds = array<i64: 1, 8, 1>}, {transform_indices = @transform_2, window_bounds = array<i64: 1, 1, 8>}, {pipeline_mode = #tpu.pipeline_mode<synchronous>, transform_indices = @transform_3, window_bounds = array<i64: 8, 6>}, {pipeline_mode = #tpu.pipeline_mode<synchronous>, transform_indices = @transform_4, window_bounds = array<i64: 8, 1>}, {pipeline_mode = #tpu.pipeline_mode<synchronous>, transform_indices = @transform_5, window_bounds = array<i64: 1, 8>}, {pipeline_mode = #tpu.pipeline_mode<synchronous>, transform_indices = @transform_6, window_bounds = array<i64: 1, 1>}, {pipeline_mode = #tpu.pipeline_mode<synchronous>, transform_indices = @transform_7, window_bounds = array<i64: 1, 1>}]} {
    %c0_i32 = arith.constant 0 : i32
    %0 = arith.cmpi eq, %arg0, %c0_i32 : i32
    %1 = arith.extui %0 : i1 to i32
    %c0_i32_0 = arith.constant 0 : i32
    %2 = arith.cmpi ne, %1, %c0_i32_0 : i32
    scf.if %2 {
      %cst_17 = arith.constant 0.000000e+00 : f32
      %36 = vector.broadcast %cst_17 : f32 to vector<8x8xf32>
      %c0_18 = arith.constant 0 : index
      %c0_19 = arith.constant 0 : index
      %37 = vector.load %arg9[%c0_18, %c0_19] : memref<8x8xf32, #tpu.memory_space<vmem>>, vector<8x8xf32>
      tpu.vector_store %arg9[%c0_18, %c0_19], %36 {strides = array<i32>} : memref<8x8xf32, #tpu.memory_space<vmem>>, vector<8x8xf32>,
    } else {
    }
    %c0 = arith.constant 0 : index
    %c0_1 = arith.constant 0 : index
    %c0_2 = arith.constant 0 : index
    %3 = vector.load %arg1[%c0, %c0_1, %c0_2] : memref<1x8x32xf32, #tpu.memory_space<vmem>>, vector<1x8x32xf32>
    %4 = vector.shape_cast %3 : vector<1x8x32xf32> to vector<8x32xf32>
    %5 = arith.truncf %4 : vector<8x32xf32> to vector<8x32xbf16>
    %6 = tpu.transpose %4, [1, 0] : vector<8x32xf32> -> vector<32x8xf32>
    %7 = arith.truncf %6 : vector<32x8xf32> to vector<32x8xbf16>
    %cst = arith.constant dense<0.000000e+00> : vector<8x8xf32>
    %8 = tpu.matmul %5, %7, %cst {dimension_numbers = #tpu.dot_dimension_numbers<[1], [0], [0], [1], [0, 0, 1, 1], [], []>} : vector<8x32xbf16>, vector<32x8xbf16>, vector<8x8xf32> -> vector<8x8xf32>
    %9 = arith.mulf %4, %4 : vector<8x32xf32>
    %cst_3 = arith.constant dense<0.000000e+00> : vector<8xf32>
    %10 = vector.multi_reduction <add>, %9, %cst_3 [1] : vector<8x32xf32> to vector<8xf32>
    %11 = vector.shape_cast %10 : vector<8xf32> to vector<8x1xf32>
    %12 = tpu.transpose %11, [1, 0] : vector<8x1xf32> -> vector<1x8xf32>
    %13 = vector.broadcast %11 : vector<8x1xf32> to vector<8x8xf32>
    %14 = vector.broadcast %12 : vector<1x8xf32> to vector<8x8xf32>
    %15 = arith.addf %13, %14 : vector<8x8xf32>
    %cst_4 = arith.constant 2.000000e+00 : f32
    %16 = vector.broadcast %cst_4 : f32 to vector<8x8xf32>
    %17 = arith.mulf %16, %8 : vector<8x8xf32>
    %18 = arith.subf %15, %17 : vector<8x8xf32>
    %cst_5 = arith.constant 9.99999996E-13 : f32
    %19 = vector.broadcast %cst_5 : f32 to vector<8x8xf32>
    %20 = arith.maximumf %18, %19 : vector<8x8xf32>
    %21 = math.sqrt %20 : vector<8x8xf32>
    %c0_6 = arith.constant 0 : index
    %c0_7 = arith.constant 0 : index
    %c0_8 = arith.constant 0 : index
    %22 = vector.load %arg2[%c0_6, %c0_7, %c0_8] : memref<1x8x1xf32, #tpu.memory_space<vmem>>, vector<1x8x1xf32>
    %23 = vector.shape_cast %22 : vector<1x8x1xf32> to vector<8x1xf32>
    %c0_9 = arith.constant 0 : index
    %c0_10 = arith.constant 0 : index
    %c0_11 = arith.constant 0 : index
    %24 = vector.load %arg3[%c0_9, %c0_10, %c0_11] : memref<1x1x8xf32, #tpu.memory_space<vmem>>, vector<1x1x8xf32>
    %25 = vector.shape_cast %24 : vector<1x1x8xf32> to vector<1x8xf32>
    %26 = vector.broadcast %23 : vector<8x1xf32> to vector<8x8xf32>
    %27 = vector.broadcast %25 : vector<1x8xf32> to vector<8x8xf32>
    %28 = arith.mulf %26, %27 : vector<8x8xf32>
    %c0_12 = arith.constant 0 : index
    %c0_13 = arith.constant 0 : index
    %29 = vector.load %arg9[%c0_12, %c0_13] : memref<8x8xf32, #tpu.memory_space<vmem>>, vector<8x8xf32>
    %30 = arith.mulf %21, %28 : vector<8x8xf32>
    %31 = arith.addf %29, %30 : vector<8x8xf32>
    %c0_14 = arith.constant 0 : index
    %c0_15 = arith.constant 0 : index
    %32 = vector.load %arg9[%c0_14, %c0_15] : memref<8x8xf32, #tpu.memory_space<vmem>>, vector<8x8xf32>
    tpu.vector_store %arg9[%c0_14, %c0_15], %31 {strides = array<i32>} : memref<8x8xf32, #tpu.memory_space<vmem>>, vector<8x8xf32>,
    %c5_i32 = arith.constant 5 : i32
    %33 = arith.cmpi eq, %arg0, %c5_i32 : i32
    %34 = arith.extui %33 : i1 to i32
    %c0_i32_16 = arith.constant 0 : i32
    %35 = arith.cmpi ne, %34, %c0_i32_16 : i32
    scf.if %35 {
      %c0_17 = arith.constant 0 : index
      %c0_18 = arith.constant 0 : index
      %36 = vector.load %arg4[%c0_17, %c0_18] : memref<8x6xf32, #tpu.memory_space<vmem>>, vector<8x6xf32>
      %37 = tpu.transpose %36, [1, 0] : vector<8x6xf32> -> vector<6x8xf32>
      %cst_19 = arith.constant dense<0.000000e+00> : vector<8x8xf32>
      %38 = tpu.matmul %36, %37, %cst_19 {dimension_numbers = #tpu.dot_dimension_numbers<[1], [0], [0], [1], [0, 0, 1, 1], [], []>} : vector<8x6xf32>, vector<6x8xf32>, vector<8x8xf32> -> vector<8x8xf32>
      %c0_20 = arith.constant 0 : index
      %c0_21 = arith.constant 0 : index
      %39 = vector.load %arg9[%c0_20, %c0_21] : memref<8x8xf32, #tpu.memory_space<vmem>>, vector<8x8xf32>
      %40 = arith.divf %39, %38 : vector<8x8xf32>
      %c0_22 = arith.constant 0 : index
      %c0_23 = arith.constant 0 : index
      %41 = vector.load %arg5[%c0_22, %c0_23] : memref<8x1xi32, #tpu.memory_space<vmem>>, vector<8x1xi32>
      %c0_24 = arith.constant 0 : index
      %c0_25 = arith.constant 0 : index
      %42 = vector.load %arg6[%c0_24, %c0_25] : memref<1x8xi32, #tpu.memory_space<vmem>>, vector<1x8xi32>
      %43 = vector.broadcast %41 : vector<8x1xi32> to vector<8x8xi32>
      %44 = vector.broadcast %42 : vector<1x8xi32> to vector<8x8xi32>
      %45 = arith.cmpi eq, %43, %44 : vector<8x8xi32>
      %cst_26 = arith.constant 0xFF800000 : f32
      %46 = vector.broadcast %cst_26 : f32 to vector<8x8xf32>
      %47 = arith.select %45, %40, %46 : vector<8x8xi1>, vector<8x8xf32>
      %cst_27 = arith.constant 0x7F800000 : f32
      %48 = vector.broadcast %cst_27 : f32 to vector<8x8xf32>
      %49 = arith.select %45, %48, %40 : vector<8x8xi1>, vector<8x8xf32>
      %cst_28 = arith.constant dense<0xFF800000> : vector<8xf32>
      %50 = vector.multi_reduction <maximumf>, %47, %cst_28 [1] : vector<8x8xf32> to vector<8xf32>
      %51 = vector.shape_cast %50 : vector<8xf32> to vector<8x1xf32>
      %cst_29 = arith.constant dense<0x7F800000> : vector<8xf32>
      %52 = vector.multi_reduction <minimumf>, %49, %cst_29 [1] : vector<8x8xf32> to vector<8xf32>
      %53 = vector.shape_cast %52 : vector<8xf32> to vector<8x1xf32>
      %54 = arith.subf %51, %53 : vector<8x1xf32>
      %cst_30 = arith.constant 0.000000e+00 : f32
      %55 = vector.broadcast %cst_30 : f32 to vector<8x1xf32>
      %56 = arith.addf %54, %55 : vector<8x1xf32>
      %cst_31 = arith.constant 0.000000e+00 : f32
      %57 = vector.broadcast %cst_31 : f32 to vector<8x1xf32>
      %58 = arith.maximumf %56, %57 : vector<8x1xf32>
      %59 = vector.shape_cast %58 : vector<8x1xf32> to vector<1x8x1xf32>
      %cst_32 = arith.constant dense<0.000000e+00> : vector<1xf32>
      %60 = vector.multi_reduction <add>, %59, %cst_32 [1, 2] : vector<1x8x1xf32> to vector<1xf32>
      %61 = vector.shape_cast %60 : vector<1xf32> to vector<1x1x1xf32>
      %62 = vector.extract %61[0, 0, 0] : f32 from vector<1x1x1xf32>
      %63 = vector.broadcast %62 : f32 to vector<1x1xf32>
      %cst_33 = arith.constant 1.250000e-01 : f32
      %64 = vector.broadcast %cst_33 : f32 to vector<1x1xf32>
      %65 = arith.mulf %63, %64 : vector<1x1xf32>
      %c0_34 = arith.constant 0 : index
      %c0_35 = arith.constant 0 : index
      %66 = vector.load %arg7[%c0_34, %c0_35] : memref<1x1xf32, #tpu.memory_space<vmem>>, vector<1x1xf32>
      tpu.vector_store %arg7[%c0_34, %c0_35], %65 {strides = array<i32>} : memref<1x1xf32, #tpu.memory_space<vmem>>, vector<1x1xf32>,
      %67 = arith.cmpf ogt, %53, %51 : vector<8x1xf32>
      %68 = arith.extui %67 : vector<8x1xi1> to vector<8x1xi32>
      %69 = arith.sitofp %68 : vector<8x1xi32> to vector<8x1xf32>
      %70 = vector.shape_cast %69 : vector<8x1xf32> to vector<1x8x1xf32>
      %cst_36 = arith.constant dense<0.000000e+00> : vector<1xf32>
      %71 = vector.multi_reduction <add>, %70, %cst_36 [1, 2] : vector<1x8x1xf32> to vector<1xf32>
      %72 = vector.shape_cast %71 : vector<1xf32> to vector<1x1x1xf32>
      %73 = vector.extract %72[0, 0, 0] : f32 from vector<1x1x1xf32>
      %74 = vector.broadcast %73 : f32 to vector<1x1xf32>
      %cst_37 = arith.constant 1.250000e-01 : f32
      %75 = vector.broadcast %cst_37 : f32 to vector<1x1xf32>
      %76 = arith.mulf %74, %75 : vector<1x1xf32>
      %c0_38 = arith.constant 0 : index
      %c0_39 = arith.constant 0 : index
      %77 = vector.load %arg8[%c0_38, %c0_39] : memref<1x1xf32, #tpu.memory_space<vmem>>, vector<1x1xf32>
      tpu.vector_store %arg8[%c0_38, %c0_39], %76 {strides = array<i32>} : memref<1x1xf32, #tpu.memory_space<vmem>>, vector<1x1xf32>,
    } else {
    }
    return
  }
  func.func @transform_0(%arg0: i32) -> (i32, i32, i32) {
    %c0_i32 = arith.constant 0 : i32
    %c0_i32_0 = arith.constant 0 : i32
    %c0_i32_1 = arith.constant 0 : i32
    return %arg0, %c0_i32, %c0_i32_0 : i32, i32, i32
  }
  func.func @transform_1(%arg0: i32) -> (i32, i32, i32) {
    %c0_i32 = arith.constant 0 : i32
    %c0_i32_0 = arith.constant 0 : i32
    %c0_i32_1 = arith.constant 0 : i32
    return %arg0, %c0_i32, %c0_i32_0 : i32, i32, i32
  }
  func.func @transform_2(%arg0: i32) -> (i32, i32, i32) {
    %c0_i32 = arith.constant 0 : i32
    %c0_i32_0 = arith.constant 0 : i32
    %c0_i32_1 = arith.constant 0 : i32
    return %arg0, %c0_i32, %c0_i32_0 : i32, i32, i32
  }
  func.func @transform_3(%arg0: i32) -> (i32, i32) {
    %c0_i32 = arith.constant 0 : i32
    %c0_i32_0 = arith.constant 0 : i32
    %c0_i32_1 = arith.constant 0 : i32
    return %c0_i32, %c0_i32_0 : i32, i32
  }
  func.func @transform_4(%arg0: i32) -> (i32, i32) {
    %c0_i32 = arith.constant 0 : i32
    %c0_i32_0 = arith.constant 0 : i32
    %c0_i32_1 = arith.constant 0 : i32
    return %c0_i32, %c0_i32_0 : i32, i32
  }
  func.func @transform_5(%arg0: i32) -> (i32, i32) {
    %c0_i32 = arith.constant 0 : i32
    %c0_i32_0 = arith.constant 0 : i32
    %c0_i32_1 = arith.constant 0 : i32
    return %c0_i32, %c0_i32_0 : i32, i32
  }
  func.func @transform_6(%arg0: i32) -> (i32, i32) {
    %c0_i32 = arith.constant 0 : i32
    %c0_i32_0 = arith.constant 0 : i32
    %c0_i32_1 = arith.constant 0 : i32
    return %c0_i32, %c0_i32_0 : i32, i32
  }
  func.func @transform_7(%arg0: i32) -> (i32, i32) {
    %c0_i32 = arith.constant 0 : i32
    %c0_i32_0 = arith.constant 0 : i32
    %c0_i32_1 = arith.constant 0 : i32
    return %c0_i32, %c0_i32_0 : i32, i32
  }
}

</mosaic_0001>

<bundles_post_ra>
// kernel: tpu_custom_call.1
= control target key start
LH: loop header
LB: loop body
LE: loop exit
PB: predicated region body
PF: predicated region fallthrough
CT: control target
= control target key end

     0   :  { %13 = vsyncpa [#allocation4], 0  ;;  %s959_s0 = inlined_call_operand.vmem [shape: f32[6,8,32], index: 0, kind: input, shape index: {}]   ;;  %s960_s1 = inlined_call_operand.vmem [shape: f32[6,8,1], index: 1, kind: input, shape index: {}]   ;;  %s961_s2 = inlined_call_operand.vmem [shape: f32[6,1,8], index: 2, kind: input, shape index: {}]   ;;  %s962_s3 = inlined_call_operand.vmem [shape: f32[8,6], index: 3, kind: input, shape index: {}]   ;;  %s963_s4 = inlined_call_operand.vmem [shape: s32[8,1], index: 4, kind: input, shape index: {}]   ;;  %s964_s5 = inlined_call_operand.vmem [shape: s32[1,8], index: 5, kind: input, shape index: {}]   ;;  %s965_s6 = inlined_call_operand.hbm [shape: f32[1,1], index: 6, kind: output, shape index: {0}]   ;;  %s966_s7 = inlined_call_operand.hbm [shape: f32[1,1], index: 7, kind: output, shape index: {1}]  }
   0x1   :  { %14 = vsyncpa [#allocation6], 0  ;;  %s867_s24 = smov 0  }
   0x2 LB: > { %s873_s25 = sadd.s32 4294967295, %s816_s24   ;;  %p675_p0 = scmp.ge.s32.totalorder %s816_s24, 1  ;;  %s816_s24 = sphi %s867_s24, %s20_s24  }
   0x3   : > { %p248_p1 = scmp.lt.s32.totalorder %s816_s24, 7 }
   0x5   : > { %p249_p2 = pnand %p675_p0, %p248_p1 }
   0x6   : > { %p281_p3 = scmp.lt.s32.totalorder (!%p249_p2), %s873_s25, 5  ;;  %p678_p4 = scmp.ne.s32.totalorder (!%p249_p2), %s873_s25, 0 }
   0x7   : > { %252 = sbr.rel (%p249_p2) target bundleno = 1015 (0x3f7), region = 44 }
   0xe   : > { %s879_s26 = scalar_select %p281_p3, %s873_s25, 5 }
   0xf   : > { %296 = sbr.rel (%p678_p4) target bundleno = 22 (0x16), region = 48  ;;  %vm297_vm0 = vcmask (!%p678_p4), 64512   ;;  %v818_v0 = vmov (!%p678_p4), 0.0  }
  0x10   : > { %s676_s27 = sshll.u32 %s879_s26, 3  ;;  %s291_s30 = scalar_lea.vmem %s961_s2, %s879_s26  ;;  %298 = vst.msk [vmem:[#allocation2] sm:$0xff] (!%p678_p4), %vm297_vm0, %v818_v0 }
  0x11   : > { %s284_s10 = scalar_lea.vmem %s959_s0, %s676_s27  ;;  %s288_s13 = scalar_lea.vmem %s960_s1, %s676_s27 }
  0x16 PF: > { %v299_v1 = vld [vmem:[%s284_s10] sm:$0xff]  ;;  %v819_v2 = vmov 0.0   ;;  %vm820_vm1 = vmmov 0   ;;  %v821_v4 = vmov 0   ;;  %vm335_vm2 = vcmask 261120   ;;  %p681_p5 = scmp.ne.s32.totalorder %s873_s25, 5 }
  0x17   : > { %301 = vxpose.xlu0.b32.start.end [1/1] (short) (narrow) %v299_v1, 32  ;;  %697 = vmatprep.subr.bf16.mxu0 %v819_v2  ;;  %v430_v3 = vld [vmem:[%s288_s13] sm:$0xff]  ;;  %v379_v5 = vmul.f32 %v299_v1, %v299_v1  ;;  %v300_v13 = vpack.c.bf16 %v299_v1, %v299_v1  ;;  %v415_v15 = vlaneseq  ;;  %vm447_vm5 = vcmask 64512  }
  0x18   : > { %701 = vmatprep.mubr.msk.bf16.mxu0 %vm820_vm1, %v819_v2  ;;  %743 = vset.pattern.permute.xlu1 %v821_v4  ;;  %v680_v30 = vld [vmem:[%s291_s30] ss:$0 sm:$0xff]  ;;  %vm454_vm6 = vcmask (!%p681_p5), 48128   ;;  %v822_v41 = vmov (!%p681_p5), 0.0   ;;  %vm823_vm7 = vmmov (!%p681_p5), 0   ;;  %v824_v42 = vmov (!%p681_p5), 0  }
  0x19   : > { %434 = vperm.xlu1 %743, %v430_v3   ;;  %v380_v6 = vsel %vm335_vm2, %v379_v5, 0.0  ;;  %v416_v16 = vshrl.u32 %v415_v15, 7  ;;  %v444_v36 = vld [vmem:[#allocation2] sm:$0xff]  ;;  %vm552_vm10 = vcmask (!%p681_p5), 7168   ;;  %vm565_vm11 = vcmask (!%p681_p5), 0  }
  0x1a   : > { %v453_v39 = vld [vmem:[%s962_s3] sm:$0xff] (!%p681_p5) }
  0x1b   : > { %v417_v18 = vsub.s32 0, %v416_v16  ;;  %v531_v40 = vld [vmem:[%s963_s4] sm:$0xff] (!%p681_p5) }
  0x1c   : > { %v684_v45 = vld [vmem:[%s964_s5] ss:$0 sm:$0xff] (!%p681_p5) }
  0x40   : > { %744 = vset.pattern.permute.xlu0 %v821_v4 }
  0x41   : > { %747 = vset.pattern.permute.xlu0 (!%p681_p5), %v824_v42 }
  0x50   : > { %381 = vadd.xlane.f32.xlu0 %v380_v6 }
  0x66   : > { %534 = vperm.xlu0 (!%p681_p5), %747, %v531_v40  }
  0x97   : > { %v317_v7 = vpop.trf.xlu0 }
  0x98   : > { %v435_v17 = vpop.permute.xlu1 %434 }
  0x99   : > { %v443_v33 = vmul.f32 %v680_v30, %v435_v17 }
  0x9b   : > { %v318_v8 = vpop.trf.xlu0 }
  0x9c   : > { %v333_v9 = vpack.c.bf16 %v318_v8, %v317_v7 }
  0x9e   : > { %698 = vmatpush3.bf16.msra.mxu0 %v333_v9 }
  0x9f   : > { %v319_v10 = vpop.trf.xlu0  ;;  %699 = vmatprep.subr.bf16.mxu0 %v819_v2 }
  0xa3   : > { %v320_v11 = vpop.trf.xlu0 }
  0xa4   : > { %v334_v12 = vpack.c.bf16 %v320_v11, %v319_v10 }
  0xa6   : > { %700 = vmatpush3.bf16.msra.mxu0 %v334_v12 }
  0xa7   : > { %705 = vmatprep.subr.mxu0 (!%p681_p5), %v822_v41 }
  0xa9   : > { %702 = vmatmul.mubr.msk.bf16.vlgmr.msra.gmra.mrb[0].mxu0 %vm335_vm2, %v300_v13 }
  0xaa   : > { %707 = vmatprep.mubr.msk.f32.mxu0 (!%p681_p5), %vm823_vm7, %v822_v41 }
  0xaf   : > { %706 = vmatpush3.xpose.msk.msra.mxu0 (!%p681_p5), %vm454_vm6, %v453_v39 }
  0xdd   : > { %v382_v14 = vpop.xlane.xlu0 %381 }
  0xde   : > { %383 = vxpose.xlu1.b32.start.end [1/1] (short) (narrow) %v382_v14, 8 }
  0xe5   : > { %v535_v46 = vpop.permute.xlu0 (!%p681_p5), %534 }
  0xe6   : > { %vm540_vm8 = vcmp.eq.s32.totalorder (!%p681_p5), %v535_v46, %v684_v45 }
 0x15e   : > { %v399_v19 = vpop.trf.xlu1 }
 0x15f   : > { %v418_v20 = vrot.slane %v399_v19, %v417_v18 }
 0x161   : > { %v419_v22 = vadd.f32 %v418_v20, %v382_v14 }
 0x17c   : > { %v373_v21 = vpop.f32.mrb[0].mxu0 }
 0x17d   : > { %v420_v23 = vmul.f32 2.0, %v373_v21  ;;  %v703_v24 = vpop.f32.mrb[1].mxu0  ;;  %708 = vmatmul.mubr.msk.f32.vlgmr.msra.gmra.mrb[0].mxu0 (!%p681_p5), %vm454_vm6, %v453_v39 }
 0x17e   : > { %v376_v25 = vpop.f32.mrb[2].mxu0 }
 0x17f   : > { %v421_v26 = vsub.f32 %v419_v22, %v420_v23  ;;  %v704_v27 = vpop.f32.mrb[3].mxu0 }
 0x181   : > { %v422_v28 = vmax.f32 %v421_v26, 1e-12 }
 0x183   : > { %745 = vrsqrt.f32 %v422_v28  ;;  %vm425_vm3 = vcmp.eq.f32.partialorder %v422_v28, inf  ;;  %v428_v32 = vand.u32 2147483648, %v422_v28  ;;  %vm427_vm4 = vcmp.eq.f32.partialorder %v422_v28, 0.0 }
 0x18d   : > { %v746_v29 = vpop.eup %745 }
 0x18e   : > { %v424_v31 = vmul.f32 %v746_v29, %v422_v28 }
 0x190   : > { %v426_v34 = vsel %vm425_vm3, %v422_v28, %v424_v31  ;;  %452 = sbr.rel (%p681_p5) target bundleno = 967 (0x3c7), region = 52 }
 0x191   : > { %v429_v35 = vsel %vm427_vm4, %v428_v32, %v426_v34 }
 0x192   : > { %v445_v37 = vmul.f32 %v443_v33, %v429_v35 }
 0x194   : > { %v446_v38 = vadd.f32 %v445_v37, %v444_v36 }
 0x196   : > { %448 = vst.msk [vmem:[#allocation2] sm:$0xff] %vm447_vm5, %v446_v38 }
 0x19d   : > { %v528_v47 = vld [vmem:[#allocation2] sm:$0xff] }
 0x250   : > { %v524_v43 = vpop.f32.mrb[0].mxu0 }
 0x251   : > { %748 = vrcp.f32 %v524_v43  ;;  %v709_v44 = vpop.f32.mrb[1].mxu0 }
 0x25b   : > { %v749_v48 = vpop.eup %748 }
 0x25c   : > { %v530_v49 = vmul.f32 %v749_v48, %v528_v47 }
 0x25e   : > { %v542_v50 = vsel %vm540_vm8, inf, %v530_v49  ;;  %v541_v51 = vsel %vm540_vm8, %v530_v49, -inf }
 0x25f   : > { %v546_v52 = vsel %vm447_vm5, %v542_v50, inf  ;;  %v543_v53 = vsel %vm447_vm5, %v541_v51, -inf }
 0x260   : > { %547 = vmin.xlane.f32.xlu1 %v546_v52  ;;  %544 = vmax.xlane.f32.xlu0 %v543_v53 }
 0x2ed   : > { %v548_v54 = vpop.xlane.xlu1 %547  ;;  %v545_v55 = vpop.xlane.xlu0 %544 }
 0x2ee   : > { %v549_v56 = vsub.f32 %v545_v55, %v548_v54  ;;  %vm567_vm9 = vcmp.gt.f32.partialorder %v548_v54, %v545_v55 }
 0x2ef   : > { %v685_v59 = vsel %vm567_vm9, 1.0, %v822_v41 }
 0x2f0   : > { %v551_v57 = vmax.f32 %v549_v56, 0.0  ;;  %v570_v60 = vsel %vm552_vm10, %v685_v59, 0.0 }
 0x2f2   : > { %v553_v58 = vsel %vm552_vm10, %v551_v57, 0.0 }
 0x2f3   : > { %554 = vadd.xlane.f32.xlu1 %v553_v58 }
 0x2f7   : > { %571 = vadd.xlane.f32.xlu1 %v570_v60 }
 0x380   : > { %v555_v61 = vpop.xlane.xlu1 %554 }
 0x381   : > { %v556_v62 = vrot.slane %v555_v61, 4 }
 0x383   : > { %v557_v63 = vadd.f32 %v556_v62, %v555_v61 }
 0x384   : > { %v572_v0 = vpop.xlane.xlu1 %571 }
 0x385   : > { %v558_v1 = vrot.slane %v557_v63, 2  ;;  %v573_v2 = vrot.slane %v572_v0, 4 }
 0x387   : > { %v574_v3 = vadd.f32 %v573_v2, %v572_v0  ;;  %v559_v4 = vadd.f32 %v558_v1, %v557_v63 }
 0x389   : > { %v575_v5 = vrot.slane %v574_v3, 2  ;;  %v560_v6 = vrot.slane %v559_v4, 1 }
 0x38b   : > { %v576_v7 = vadd.f32 %v575_v5, %v574_v3  ;;  %v561_v8 = vadd.f32 %v560_v6, %v559_v4 }
 0x38d   : > { %710 = vpush %v561_v8  ;;  %v577_v9 = vrot.slane %v576_v7, 1 }
 0x38f   : > { %v578_v10 = vadd.f32 %v577_v9, %v576_v7 }
 0x391   : > { %712 = vpush %v578_v10 }
 0x3be   : > { %s711_s22 = spop %710 }
 0x3bf   : > { %v563_v11 = vstv %s711_s22 }
 0x3c0   : > { %v564_v12 = vmul.f32 0.125, %v563_v11 }
 0x3c2   : > { %566 = vst.msk [vmem:[#allocation3] sm:$0x1] %vm565_vm11, %v564_v12  ;;  %s713_s23 = spop %712 }
 0x3c3   : > { %v580_v13 = vstv %s713_s23 }
 0x3c4   : > { %v581_v14 = vmul.f32 0.125, %v580_v13 }
 0x3c6   : > { %582 = vst.msk [vmem:[#allocation5] sm:$0x1] %vm565_vm11, %v581_v14 }
 0x3c7 PF: > { %p722_p6 = scmp.eq.s32.totalorder %s873_s25, 5  ;;  %s825_s26 = smov [#allocation3]  }
 0x3c8   : > { %s590_s27 = sshll.u32 %s825_s26, 4  ;;  %s826_s28 = smov [#allocation5]   ;;  %s591_s27 = int_to_ptr.vmem [resolvable:$true] %s590_s27 }
 0x3c9   : > { %s601_s29 = sshll.u32 %s826_s28, 4  ;;  %s750_s30 = scalar_lea.vmem %s591_s27, 16  ;;  %s602_s29 = int_to_ptr.vmem [resolvable:$true] %s601_s29 }
 0x3ca   : > { %p751_p7 = scmp.ne.s32.totalorder %s591_s27, %s750_s30  ;;  %s756_s8 = scalar_lea.vmem %s591_s27, 32 }
 0x3cb   : > { %p757_p10 = scmp.lt.s32.totalorder %s591_s27, %s591_s27  ;;  %p758_p11 = scmp.lt.s32.totalorder %s756_s8, %s750_s30 }
 0x3cc   : > { %p752_p8 = pnand %p751_p7, %p722_p6 }
 0x3cd   : > { %p759_p12 = por %p758_p11, %p757_p10 }
 0x3ce   : > { %p753_p9 = pneg %p752_p8 }
 0x3d0   : > { %p760_p13 = pnand %p759_p12, %p753_p9 }
 0x3d2   : > { %763 = shalt.err (!%p760_p13)
}
 0x3d3   : > { %s764_s11 = scalar_lea.hbm %s965_s6, 16 }
 0x3d4   : > { %p765_p0 = scmp.ne.s32.totalorder %s965_s6, %s764_s11  ;;  %p770_p3 = scmp.lt.u32.totalorder %s764_s11, %s965_s6 }
 0x3d6   : > { %p766_p1 = pnand %p765_p0, %p722_p6 }
 0x3d8   : > { %p767_p2 = pneg %p766_p1 }
 0x3da   : > { %p772_p4 = pnand %p770_p3, %p767_p2 }
 0x3dc   : > { %775 = shalt.err (!%p772_p4)
}
 0x3dd   : > { %715 = dma.vmem_to_hbm [thread:$0]  (%p722_p6), %s591_s27, 16, %s965_s6, [#allocation4]  }
 0x3de   : > { %s776_s18 = scalar_lea.vmem %s602_s29, 16  ;;  %s782_s19 = scalar_lea.vmem %s602_s29, 32 }
 0x3df   : > { %p777_p5 = scmp.ne.s32.totalorder %s602_s29, %s776_s18  ;;  %p783_p9 = scmp.lt.s32.totalorder %s602_s29, %s602_s29 }
 0x3e0   : > { %p784_p10 = scmp.lt.s32.totalorder %s782_s19, %s776_s18 }
 0x3e1   : > { %p778_p7 = pnand %p777_p5, %p722_p6 }
 0x3e2   : > { %p785_p11 = por %p784_p10, %p783_p9 }
 0x3e3   : > { %p779_p8 = pneg %p778_p7 }
 0x3e5   : > { %p786_p12 = pnand %p785_p11, %p779_p8 }
 0x3e7   : > { %789 = shalt.err (!%p786_p12)
}
 0x3e8   : > { %s790_s22 = scalar_lea.hbm %s966_s7, 16 }
 0x3e9   : > { %p791_p13 = scmp.ne.s32.totalorder %s966_s7, %s790_s22  ;;  %p796_p2 = scmp.lt.u32.totalorder %s790_s22, %s966_s7 }
 0x3eb   : > { %p792_p0 = pnand %p791_p13, %p722_p6 }
 0x3ed   : > { %p793_p1 = pneg %p792_p0 }
 0x3ef   : > { %p798_p3 = pnand %p796_p2, %p793_p1 }
 0x3f1   : > { %801 = shalt.err (!%p798_p3)
}
 0x3f2   : > { %717 = dma.vmem_to_hbm [thread:$0]  (%p722_p6), %s602_s29, 16, %s966_s7, [#allocation6]  }
 0x3f3   : > { %807 = dma.done.wait (%p722_p6), [#allocation4], 16  }
 0x3f4   : > { %809 = vsyncadd (%p722_p6), [#allocation4], 4294967280 }
 0x3f5   : > { %811 = dma.done.wait (%p722_p6), [#allocation6], 16  }
 0x3f6   : > { %813 = vsyncadd (%p722_p6), [#allocation6], 4294967280 }
 0x3f7 PF: > { %s20_s24 = sadd.s32 1, %s816_s24  }
 0x3f8   : > { %p17_p4 = scmp.ge.s32.totalorder %s20_s24, 8  }
 0x3fa   :  { %19 = sbr.rel (!%p17_p4) target bundleno = 2 (0x2), region = 93 }
 0x401   :  { %618 = vsyncpa [#allocation4], 1 }
 0x402   :  { %620 = vsyncpa [#allocation4 + $0x1], 1 }
 0x403   :  { %621 = vsyncpa [#allocation6], 1 }

</bundles_post_ra>
